<compile_context>
chip_gen: v5e
topology: v5e:2x2
jax: 0.10.0
libtpu: 0.0.40
codegen_flags: <defaults>
</compile_context>

<pallas_src>
import functools

import jax
import jax.numpy as jnp
from jax.experimental import pallas as pl
from jax.experimental.pallas import tpu as pltpu

BN_EPS = 1e-5


def _round_up(x, m):
    return (x + m - 1) // m * m


def _conv_stats_kernel(xc_ref, w_ref, y_ref, sum_ref, ssq_ref):
    """One M-tile: (tm, Kp) x (Kp, Cp) MXU matmul (f32 acc) + global BN
    partial sums accumulated across the grid into resident (1, Cp) outputs."""
    y = jnp.dot(xc_ref[...], w_ref[...], preferred_element_type=jnp.float32)
    y_ref[...] = y

    @pl.when(pl.program_id(0) == 0)
    def _init():
        sum_ref[...] = jnp.zeros_like(sum_ref)
        ssq_ref[...] = jnp.zeros_like(ssq_ref)

    sum_ref[...] += jnp.sum(y, axis=0, keepdims=True)
    ssq_ref[...] += jnp.sum(y * y, axis=0, keepdims=True)


def _bn_relu_kernel(y_ref, scale_ref, shift_ref, out_ref):
    """Fused BatchNorm affine + ReLU, lane-dense (tm, Cp) tiles."""
    out_ref[...] = jnp.maximum(y_ref[...] * scale_ref[...] + shift_ref[...], 0.0)


def _im2col(x_nhwc):
    """(N,H,W,C) -> lane-dense (N*H*W, 9*C) slab, tap-major / channel-minor
    (matches w_hwio.reshape(9*Cin, Cout) flattening)."""
    N, H, W, C = x_nhwc.shape
    xp = jnp.pad(x_nhwc, ((0, 0), (1, 1), (1, 1), (0, 0)))
    cols = [xp[:, ky:ky + H, kx:kx + W, :] for ky in range(3) for kx in range(3)]
    return jnp.concatenate(cols, axis=-1).reshape(N * H * W, 9 * C)


def conv_bn_relu(x_nhwc, w_hwio, gamma, beta, *, tm=512):
    """One Conv2d(3x3, stride 1, pad 1, no bias) + BatchNorm2d + ReLU block."""
    N, H, W, Cin = x_nhwc.shape
    Cout = w_hwio.shape[-1]
    M = N * H * W
    K = 9 * Cin
    Kp = _round_up(K, 128)          # contraction dim, lane/MXU aligned
    Cp = _round_up(Cout, 128)       # lane-dense output stores
    Mp = _round_up(M, tm)
    grid = (Mp // tm,)

    # Lane-dense im2col operand in bf16 (halves HBM/VMEM traffic; f32 acc).
    xcols = _im2col(x_nhwc)
    xcols = jnp.pad(xcols, ((0, Mp - M), (0, Kp - K))).astype(jnp.bfloat16)
    w = jnp.pad(w_hwio.reshape(K, Cout),
                ((0, Kp - K), (0, Cp - Cout))).astype(jnp.bfloat16)

    # Pass 1: conv (single folded-K matmul per tile) + global BN partial sums.
    y, s1, s2 = pl.pallas_call(
        _conv_stats_kernel,
        out_shape=(
            jax.ShapeDtypeStruct((Mp, Cp), jnp.float32),   # conv output
            jax.ShapeDtypeStruct((1, Cp), jnp.float32),    # sum
            jax.ShapeDtypeStruct((1, Cp), jnp.float32),    # sum of squares
        ),
        grid=grid,
        in_specs=[
            pl.BlockSpec((tm, Kp), lambda i: (i, 0)),
            pl.BlockSpec((Kp, Cp), lambda i: (0, 0)),      # weights resident
        ],
        out_specs=[
            pl.BlockSpec((tm, Cp), lambda i: (i, 0)),
            pl.BlockSpec((1, Cp), lambda i: (0, 0)),       # resident accumulator
            pl.BlockSpec((1, Cp), lambda i: (0, 0)),       # resident accumulator
        ],
        compiler_params=pltpu.CompilerParams(
            dimension_semantics=("arbitrary",)),
    )(xcols, w)

    # Finalize global BN statistics (tiny per-channel math; pure glue).
    mean = s1[0] / M
    var = jnp.maximum(s2[0] / M - mean * mean, 0.0)
    gamma_p = jnp.pad(gamma.astype(jnp.float32), (0, Cp - Cout))
    beta_p = jnp.pad(beta.astype(jnp.float32), (0, Cp - Cout))
    scale = gamma_p * jax.lax.rsqrt(var + BN_EPS)
    shift = beta_p - mean * scale

    # Pass 2: fused affine + ReLU, fully parallel over M tiles.
    out = pl.pallas_call(
        _bn_relu_kernel,
        out_shape=jax.ShapeDtypeStruct((Mp, Cp), jnp.float32),
        grid=grid,
        in_specs=[
            pl.BlockSpec((tm, Cp), lambda i: (i, 0)),
            pl.BlockSpec((1, Cp), lambda i: (0, 0)),
            pl.BlockSpec((1, Cp), lambda i: (0, 0)),
        ],
        out_specs=pl.BlockSpec((tm, Cp), lambda i: (i, 0)),
        compiler_params=pltpu.CompilerParams(
            dimension_semantics=("parallel",)),
    )(y, scale.reshape(1, Cp), shift.reshape(1, Cp))

    return out[:M, :Cout].reshape(N, H, W, Cout)


def double_conv(x_nchw, params, *, tm=512):
    """Forward pass of DoubleConv. Input/output are NCHW (PyTorch convention)."""
    (w1, g1, b1), (w2, g2, b2) = params
    x_nhwc = jnp.transpose(x_nchw, (0, 2, 3, 1)).astype(jnp.float32)
    h = conv_bn_relu(x_nhwc, w1, g1, b1, tm=tm)
    h = conv_bn_relu(h, w2, g2, b2, tm=tm)
    return jnp.transpose(h, (0, 3, 1, 2))


def init_params(key, in_channels, out_channels):
    """Deterministic synthetic parameters (PyTorch default BN affine: gamma=1, beta=0)."""
    k1, k2 = jax.random.split(key)
    # Conv weights stored HWIO: (3, 3, Cin, Cout).
    w1 = 0.1 * jax.random.normal(k1, (3, 3, in_channels, out_channels), jnp.float32)
    w2 = 0.1 * jax.random.normal(k2, (3, 3, out_channels, out_channels), jnp.float32)
    g1 = jnp.ones((out_channels,), jnp.float32)
    b1 = jnp.zeros((out_channels,), jnp.float32)
    g2 = jnp.ones((out_channels,), jnp.float32)
    b2 = jnp.zeros((out_channels,), jnp.float32)
    return (w1, g1, b1), (w2, g2, b2)


def _ref_block(x_nhwc, w_hwio, gamma, beta, conv_dtype):
    y = jax.lax.conv_general_dilated(
        x_nhwc.astype(conv_dtype), w_hwio.astype(conv_dtype),
        window_strides=(1, 1), padding="SAME",
        dimension_numbers=("NHWC", "HWIO", "NHWC"),
        preferred_element_type=jnp.float32)
    mean = y.mean(axis=(0, 1, 2))
    var = y.var(axis=(0, 1, 2))
    yn = (y - mean) * jax.lax.rsqrt(var + BN_EPS) * gamma + beta
    return jnp.maximum(yn, 0.0)


def _ref_double_conv(x_nchw, params, conv_dtype):
    (w1, g1, b1), (w2, g2, b2) = params
    x = jnp.transpose(x_nchw, (0, 2, 3, 1)).astype(jnp.float32)
    h = _ref_block(x, w1, g1, b1, conv_dtype)
    h = _ref_block(h, w2, g2, b2, conv_dtype)
    return jnp.transpose(h, (0, 3, 1, 2))


if __name__ == "__main__":
    key = jax.random.PRNGKey(0)
    kx, kp = jax.random.split(key)

    N, Cin, Cout, S = 2, 4, 8, 16
    x = jax.random.normal(kx, (N, Cin, S, S), jnp.float32)   # NCHW, like PyTorch
    params = init_params(kp, Cin, Cout)

    # tm=128 -> 4 grid steps at this size, exercising the resident accumulators.
    fwd = jax.jit(functools.partial(double_conv, tm=128))
    out = jax.block_until_ready(fwd(x, params))
    assert out.shape == (N, Cout, S, S), out.shape

    # Tight check against a reference that applies the same bf16 operand
    # rounding (isolates kernel correctness from the bf16 cast).
    ref_bf16 = jax.block_until_ready(_ref_double_conv(x, params, jnp.bfloat16))
    err_b = float(jnp.max(jnp.abs(out - ref_bf16)))
    assert jnp.allclose(out, ref_bf16, rtol=2e-3, atol=2e-3), err_b

    # Semantic check against the pure-f32 PyTorch math (bf16-level tolerance).
    ref_f32 = jax.block_until_ready(_ref_double_conv(x, params, jnp.float32))
    err_f = float(jnp.max(jnp.abs(out - ref_f32)))
    assert jnp.allclose(out, ref_f32, rtol=5e-2, atol=5e-2), err_f

    print("KERNEL_OK")
</pallas_src>

<mosaic_0001>
module attributes {stable_mosaic.version = 11 : i64} {
  func.func @_bn_relu_kernel(%arg0: i32, %arg1: memref<128x128xf32, #tpu.memory_space<vmem>>, %arg2: memref<1x128xf32, #tpu.memory_space<vmem>>, %arg3: memref<1x128xf32, #tpu.memory_space<vmem>>, %arg4: memref<128x128xf32, #tpu.memory_space<vmem>>) attributes {dimension_semantics = [#tpu.dimension_semantics<parallel>], iteration_bounds = array<i64: 4>, scalar_prefetch = 0 : i64, scratch_operands = 0 : i64, tpu.core_type = #tpu.core_type<tc>, window_params = [{transform_indices = @transform_0, window_bounds = array<i64: 128, 128>}, {pipeline_mode = #tpu.pipeline_mode<synchronous>, transform_indices = @transform_1, window_bounds = array<i64: 1, 128>}, {pipeline_mode = #tpu.pipeline_mode<synchronous>, transform_indices = @transform_2, window_bounds = array<i64: 1, 128>}, {transform_indices = @transform_3, window_bounds = array<i64: 128, 128>}]} {
    %c0 = arith.constant 0 : index
    %c0_0 = arith.constant 0 : index
    %0 = vector.load %arg1[%c0, %c0_0] : memref<128x128xf32, #tpu.memory_space<vmem>>, vector<128x128xf32>
    %c0_1 = arith.constant 0 : index
    %c0_2 = arith.constant 0 : index
    %1 = vector.load %arg2[%c0_1, %c0_2] : memref<1x128xf32, #tpu.memory_space<vmem>>, vector<1x128xf32>
    %2 = vector.broadcast %1 : vector<1x128xf32> to vector<128x128xf32>
    %3 = arith.mulf %0, %2 : vector<128x128xf32>
    %c0_3 = arith.constant 0 : index
    %c0_4 = arith.constant 0 : index
    %4 = vector.load %arg3[%c0_3, %c0_4] : memref<1x128xf32, #tpu.memory_space<vmem>>, vector<1x128xf32>
    %5 = vector.broadcast %4 : vector<1x128xf32> to vector<128x128xf32>
    %6 = arith.addf %3, %5 : vector<128x128xf32>
    %cst = arith.constant 0.000000e+00 : f32
    %7 = vector.broadcast %cst : f32 to vector<128x128xf32>
    %8 = arith.maximumf %6, %7 : vector<128x128xf32>
    %c0_5 = arith.constant 0 : index
    %c0_6 = arith.constant 0 : index
    %9 = vector.load %arg4[%c0_5, %c0_6] : memref<128x128xf32, #tpu.memory_space<vmem>>, vector<128x128xf32>
    tpu.vector_store %arg4[%c0_5, %c0_6], %8 {strides = array<i32>} : memref<128x128xf32, #tpu.memory_space<vmem>>, vector<128x128xf32>,
    return
  }
  func.func @transform_0(%arg0: i32) -> (i32, i32) {
    %c0_i32 = arith.constant 0 : i32
    %c0_i32_0 = arith.constant 0 : i32
    return %arg0, %c0_i32 : i32, i32
  }
  func.func @transform_1(%arg0: i32) -> (i32, i32) {
    %c0_i32 = arith.constant 0 : i32
    %c0_i32_0 = arith.constant 0 : i32
    %c0_i32_1 = arith.constant 0 : i32
    return %c0_i32, %c0_i32_0 : i32, i32
  }
  func.func @transform_2(%arg0: i32) -> (i32, i32) {
    %c0_i32 = arith.constant 0 : i32
    %c0_i32_0 = arith.constant 0 : i32
    %c0_i32_1 = arith.constant 0 : i32
    return %c0_i32, %c0_i32_0 : i32, i32
  }
  func.func @transform_3(%arg0: i32) -> (i32, i32) {
    %c0_i32 = arith.constant 0 : i32
    %c0_i32_0 = arith.constant 0 : i32
    return %arg0, %c0_i32 : i32, i32
  }
}

module attributes {stable_mosaic.version = 11 : i64} {
  func.func @_conv_stats_kernel(%arg0: i32, %arg1: memref<128x128xbf16, #tpu.memory_space<vmem>>, %arg2: memref<128x128xbf16, #tpu.memory_space<vmem>>, %arg3: memref<128x128xf32, #tpu.memory_space<vmem>>, %arg4: memref<1x128xf32, #tpu.memory_space<vmem>>, %arg5: memref<1x128xf32, #tpu.memory_space<vmem>>) attributes {dimension_semantics = [#tpu.dimension_semantics<arbitrary>], iteration_bounds = array<i64: 4>, scalar_prefetch = 0 : i64, scratch_operands = 0 : i64, tpu.core_type = #tpu.core_type<tc>, window_params = [{transform_indices = @transform_0, window_bounds = array<i64: 128, 128>}, {pipeline_mode = #tpu.pipeline_mode<synchronous>, transform_indices = @transform_1, window_bounds = array<i64: 128, 128>}, {transform_indices = @transform_2, window_bounds = array<i64: 128, 128>}, {pipeline_mode = #tpu.pipeline_mode<synchronous>, transform_indices = @transform_3, window_bounds = array<i64: 1, 128>}, {pipeline_mode = #tpu.pipeline_mode<synchronous>, transform_indices = @transform_4, window_bounds = array<i64: 1, 128>}]} {
    %c0 = arith.constant 0 : index
    %c0_0 = arith.constant 0 : index
    %0 = vector.load %arg1[%c0, %c0_0] : memref<128x128xbf16, #tpu.memory_space<vmem>>, vector<128x128xbf16>
    %c0_1 = arith.constant 0 : index
    %c0_2 = arith.constant 0 : index
    %1 = vector.load %arg2[%c0_1, %c0_2] : memref<128x128xbf16, #tpu.memory_space<vmem>>, vector<128x128xbf16>
    %cst = arith.constant dense<0.000000e+00> : vector<128x128xf32>
    %2 = tpu.matmul %0, %1, %cst {dimension_numbers = #tpu.dot_dimension_numbers<[1], [0], [0], [1], [0, 0, 1, 1], [], []>} : vector<128x128xbf16>, vector<128x128xbf16>, vector<128x128xf32> -> vector<128x128xf32>
    %c0_3 = arith.constant 0 : index
    %c0_4 = arith.constant 0 : index
    %3 = vector.load %arg3[%c0_3, %c0_4] : memref<128x128xf32, #tpu.memory_space<vmem>>, vector<128x128xf32>
    tpu.vector_store %arg3[%c0_3, %c0_4], %2 {strides = array<i32>} : memref<128x128xf32, #tpu.memory_space<vmem>>, vector<128x128xf32>,
    %c0_i32 = arith.constant 0 : i32
    %4 = arith.cmpi eq, %arg0, %c0_i32 : i32
    %5 = arith.extui %4 : i1 to i32
    %c0_i32_5 = arith.constant 0 : i32
    %6 = arith.cmpi ne, %5, %c0_i32_5 : i32
    scf.if %6 {
      %cst_16 = arith.constant 0.000000e+00 : f32
      %18 = vector.broadcast %cst_16 : f32 to vector<1x128xf32>
      %c0_17 = arith.constant 0 : index
      %c0_18 = arith.constant 0 : index
      %19 = vector.load %arg4[%c0_17, %c0_18] : memref<1x128xf32, #tpu.memory_space<vmem>>, vector<1x128xf32>
      tpu.vector_store %arg4[%c0_17, %c0_18], %18 {strides = array<i32>} : memref<1x128xf32, #tpu.memory_space<vmem>>, vector<1x128xf32>,
      %cst_19 = arith.constant 0.000000e+00 : f32
      %20 = vector.broadcast %cst_19 : f32 to vector<1x128xf32>
      %c0_20 = arith.constant 0 : index
      %c0_21 = arith.constant 0 : index
      %21 = vector.load %arg5[%c0_20, %c0_21] : memref<1x128xf32, #tpu.memory_space<vmem>>, vector<1x128xf32>
      tpu.vector_store %arg5[%c0_20, %c0_21], %20 {strides = array<i32>} : memref<1x128xf32, #tpu.memory_space<vmem>>, vector<1x128xf32>,
    } else {
    }
    %c0_6 = arith.constant 0 : index
    %c0_7 = arith.constant 0 : index
    %7 = vector.load %arg4[%c0_6, %c0_7] : memref<1x128xf32, #tpu.memory_space<vmem>>, vector<1x128xf32>
    %cst_8 = arith.constant dense<0.000000e+00> : vector<128xf32>
    %8 = vector.multi_reduction <add>, %2, %cst_8 [0] : vector<128x128xf32> to vector<128xf32>
    %9 = vector.shape_cast %8 : vector<128xf32> to vector<1x128xf32>
    %10 = arith.addf %7, %9 : vector<1x128xf32>
    %c0_9 = arith.constant 0 : index
    %c0_10 = arith.constant 0 : index
    %11 = vector.load %arg4[%c0_9, %c0_10] : memref<1x128xf32, #tpu.memory_space<vmem>>, vector<1x128xf32>
    tpu.vector_store %arg4[%c0_9, %c0_10], %10 {strides = array<i32>} : memref<1x128xf32, #tpu.memory_space<vmem>>, vector<1x128xf32>,
    %c0_11 = arith.constant 0 : index
    %c0_12 = arith.constant 0 : index
    %12 = vector.load %arg5[%c0_11, %c0_12] : memref<1x128xf32, #tpu.memory_space<vmem>>, vector<1x128xf32>
    %13 = arith.mulf %2, %2 : vector<128x128xf32>
    %cst_13 = arith.constant dense<0.000000e+00> : vector<128xf32>
    %14 = vector.multi_reduction <add>, %13, %cst_13 [0] : vector<128x128xf32> to vector<128xf32>
    %15 = vector.shape_cast %14 : vector<128xf32> to vector<1x128xf32>
    %16 = arith.addf %12, %15 : vector<1x128xf32>
    %c0_14 = arith.constant 0 : index
    %c0_15 = arith.constant 0 : index
    %17 = vector.load %arg5[%c0_14, %c0_15] : memref<1x128xf32, #tpu.memory_space<vmem>>, vector<1x128xf32>
    tpu.vector_store %arg5[%c0_14, %c0_15], %16 {strides = array<i32>} : memref<1x128xf32, #tpu.memory_space<vmem>>, vector<1x128xf32>,
    return
  }
  func.func @transform_0(%arg0: i32) -> (i32, i32) {
    %c0_i32 = arith.constant 0 : i32
    %c0_i32_0 = arith.constant 0 : i32
    return %arg0, %c0_i32 : i32, i32
  }
  func.func @transform_1(%arg0: i32) -> (i32, i32) {
    %c0_i32 = arith.constant 0 : i32
    %c0_i32_0 = arith.constant 0 : i32
    %c0_i32_1 = arith.constant 0 : i32
    return %c0_i32, %c0_i32_0 : i32, i32
  }
  func.func @transform_2(%arg0: i32) -> (i32, i32) {
    %c0_i32 = arith.constant 0 : i32
    %c0_i32_0 = arith.constant 0 : i32
    return %arg0, %c0_i32 : i32, i32
  }
  func.func @transform_3(%arg0: i32) -> (i32, i32) {
    %c0_i32 = arith.constant 0 : i32
    %c0_i32_0 = arith.constant 0 : i32
    %c0_i32_1 = arith.constant 0 : i32
    return %c0_i32, %c0_i32_0 : i32, i32
  }
  func.func @transform_4(%arg0: i32) -> (i32, i32) {
    %c0_i32 = arith.constant 0 : i32
    %c0_i32_0 = arith.constant 0 : i32
    %c0_i32_1 = arith.constant 0 : i32
    return %c0_i32, %c0_i32_0 : i32, i32
  }
}

</mosaic_0001>

<bundles_post_ra>
// kernel: double_conv.5
= control target key start
LH: loop header
LB: loop body
LE: loop exit
PB: predicated region body
PF: predicated region fallthrough
CT: control target
= control target key end

     0   :  { %s367_s12 = smov 0   ;;  %s444_s0 = inlined_call_operand.vmem [shape: f32[512,128], index: 0, kind: input, shape index: {}]   ;;  %s445_s1 = inlined_call_operand.vmem [shape: f32[1,128], index: 1, kind: input, shape index: {}]   ;;  %s446_s2 = inlined_call_operand.vmem [shape: f32[1,128], index: 2, kind: input, shape index: {}]   ;;  %s447_s3 = inlined_call_operand.vmem [shape: f32[512,128], index: 3, kind: output, shape index: {}]  }
   0x1 LB: > { %s318_s13 = sadd.s32 4294967295, %s345_s12   ;;  %p322_p0 = scmp.ge.s32.totalorder %s345_s12, 1  ;;  %s345_s12 = sphi %s367_s12, %s13_s12  }
   0x2   : > { %p138_p1 = scmp.lt.s32.totalorder %s345_s12, 5 }
   0x4   : > { %p139_p2 = pnand %p322_p0, %p138_p1 }
   0x5   : > { %s323_s14 = sshll.u32 (!%p139_p2), %s318_s13, 4 }
   0x6   : > { %142 = sbr.rel (%p139_p2) target bundleno = 37 (0x25), region = 32  ;;  %p163_p3 = scmp.lt.s32.totalorder (!%p139_p2), %s323_s14, 63 }
   0xb   : > { %s449_s14 = smov (!%p163_p3, %s323_s14), 63  ;;  %v337_v0 = vld [vmem:[%s445_s1] ss:$0 sm:$0xff] }
   0xc   : > { %s324_s17 = sshll.u32 %s449_s14, 3  ;;  %v386_v1 = vld [vmem:[%s446_s2] ss:$0 sm:$0xff] }
   0xd   : > { %s381_s20 = scalar_lea.vmem %s444_s0, %s324_s17  ;;  %s402_s25 = scalar_lea.vmem %s447_s3, %s324_s17 }
   0xe   : > { %v174_v2 = vld [vmem:[%s381_s20] sm:$0xff]  ;;  %v175_v3 = vld [vmem:[%s381_s20 + $0x8] sm:$0xff]  ;;  %v176_v4 = vld [vmem:[%s381_s20 + $0x10] sm:$0xff] }
   0xf   : > { %v194_v5 = vmul.f32 %v337_v0, %v174_v2  ;;  %v195_v6 = vmul.f32 %v337_v0, %v175_v3  ;;  %v196_v7 = vmul.f32 %v337_v0, %v176_v4  ;;  %v177_v8 = vld [vmem:[%s381_s20 + $0x18] sm:$0xff]  ;;  %v178_v9 = vld [vmem:[%s381_s20 + $0x20] sm:$0xff]  ;;  %v179_v10 = vld [vmem:[%s381_s20 + $0x28] sm:$0xff] }
  0x10   : > { %v197_v11 = vmul.f32 %v337_v0, %v177_v8  ;;  %v198_v12 = vmul.f32 %v337_v0, %v178_v9  ;;  %v199_v13 = vmul.f32 %v337_v0, %v179_v10  ;;  %v180_v14 = vld [vmem:[%s381_s20 + $0x30] sm:$0xff]  ;;  %v181_v15 = vld [vmem:[%s381_s20 + $0x38] sm:$0xff]  ;;  %v182_v24 = vld [vmem:[%s381_s20 + $0x40] sm:$0xff] }
  0x11   : > { %v214_v16 = vadd.f32 %v386_v1, %v194_v5  ;;  %v215_v17 = vadd.f32 %v386_v1, %v195_v6  ;;  %v216_v18 = vadd.f32 %v386_v1, %v196_v7  ;;  %v200_v19 = vmul.f32 %v337_v0, %v180_v14  ;;  %v183_v25 = vld [vmem:[%s381_s20 + $0x48] sm:$0xff]  ;;  %v184_v26 = vld [vmem:[%s381_s20 + $0x50] sm:$0xff]  ;;  %v185_v31 = vld [vmem:[%s381_s20 + $0x58] sm:$0xff] }
  0x12   : > { %v217_v20 = vadd.f32 %v386_v1, %v197_v11  ;;  %v218_v21 = vadd.f32 %v386_v1, %v198_v12  ;;  %v219_v22 = vadd.f32 %v386_v1, %v199_v13  ;;  %v201_v23 = vmul.f32 %v337_v0, %v181_v15  ;;  %v186_v32 = vld [vmem:[%s381_s20 + $0x60] sm:$0xff]  ;;  %v187_v33 = vld [vmem:[%s381_s20 + $0x68] sm:$0xff]  ;;  %v188_v37 = vld [vmem:[%s381_s20 + $0x70] sm:$0xff] }
  0x13   : > { %v230_v27 = vmax.f32 %v214_v16, 0.0  ;;  %v231_v28 = vmax.f32 %v215_v17, 0.0  ;;  %v232_v29 = vmax.f32 %v216_v18, 0.0  ;;  %v220_v30 = vadd.f32 %v386_v1, %v200_v19  ;;  %v189_v42 = vld [vmem:[%s381_s20 + $0x78] sm:$0xff] }
  0x14   : > { %v233_v34 = vmax.f32 %v217_v20, 0.0  ;;  %v234_v35 = vmax.f32 %v218_v21, 0.0  ;;  %v221_v36 = vadd.f32 %v386_v1, %v201_v23  ;;  %v235_v38 = vmax.f32 %v219_v22, 0.0 }
  0x15   : > { %246 = vst [vmem:[%s402_s25] sm:$0xff] %v230_v27  ;;  %v202_v39 = vmul.f32 %v337_v0, %v182_v24  ;;  %v203_v40 = vmul.f32 %v337_v0, %v183_v25  ;;  %v204_v41 = vmul.f32 %v337_v0, %v184_v26  ;;  %v236_v43 = vmax.f32 %v220_v30, 0.0 }
  0x16   : > { %247 = vst [vmem:[%s402_s25 + $0x8] sm:$0xff] %v231_v28  ;;  %v205_v44 = vmul.f32 %v337_v0, %v185_v31  ;;  %v206_v45 = vmul.f32 %v337_v0, %v186_v32  ;;  %v207_v46 = vmul.f32 %v337_v0, %v187_v33  ;;  %v208_v50 = vmul.f32 %v337_v0, %v188_v37 }
  0x17   : > { %248 = vst [vmem:[%s402_s25 + $0x10] sm:$0xff] %v232_v29  ;;  %v222_v47 = vadd.f32 %v386_v1, %v202_v39  ;;  %v223_v48 = vadd.f32 %v386_v1, %v203_v40  ;;  %v224_v49 = vadd.f32 %v386_v1, %v204_v41  ;;  %v237_v51 = vmax.f32 %v221_v36, 0.0 }
  0x18   : > { %249 = vst [vmem:[%s402_s25 + $0x18] sm:$0xff] %v233_v34  ;;  %v225_v52 = vadd.f32 %v386_v1, %v205_v44  ;;  %v209_v53 = vmul.f32 %v337_v0, %v189_v42  ;;  %v226_v55 = vadd.f32 %v386_v1, %v206_v45  ;;  %v227_v57 = vadd.f32 %v386_v1, %v207_v46 }
  0x19   : > { %250 = vst [vmem:[%s402_s25 + $0x20] sm:$0xff] %v234_v35  ;;  %v238_v54 = vmax.f32 %v222_v47, 0.0  ;;  %v239_v56 = vmax.f32 %v223_v48, 0.0  ;;  %v240_v58 = vmax.f32 %v224_v49, 0.0  ;;  %v228_v59 = vadd.f32 %v386_v1, %v208_v50 }
  0x1a   : > { %251 = vst [vmem:[%s402_s25 + $0x28] sm:$0xff] %v235_v38  ;;  %v241_v60 = vmax.f32 %v225_v52, 0.0  ;;  %v229_v61 = vadd.f32 %v386_v1, %v209_v53  ;;  %v242_v62 = vmax.f32 %v226_v55, 0.0  ;;  %v243_v63 = vmax.f32 %v227_v57, 0.0 }
  0x1b   : > { %252 = vst [vmem:[%s402_s25 + $0x30] sm:$0xff] %v236_v43  ;;  %v244_v0 = vmax.f32 %v228_v59, 0.0 }
  0x1c   : > { %253 = vst [vmem:[%s402_s25 + $0x38] sm:$0xff] %v237_v51  ;;  %v245_v2 = vmax.f32 %v229_v61, 0.0 }
  0x1d   : > { %254 = vst [vmem:[%s402_s25 + $0x40] sm:$0xff] %v238_v54 }
  0x1e   : > { %255 = vst [vmem:[%s402_s25 + $0x48] sm:$0xff] %v239_v56 }
  0x1f   : > { %256 = vst [vmem:[%s402_s25 + $0x50] sm:$0xff] %v240_v58 }
  0x20   : > { %257 = vst [vmem:[%s402_s25 + $0x58] sm:$0xff] %v241_v60 }
  0x21   : > { %258 = vst [vmem:[%s402_s25 + $0x60] sm:$0xff] %v242_v62 }
  0x22   : > { %259 = vst [vmem:[%s402_s25 + $0x68] sm:$0xff] %v243_v63 }
  0x23   : > { %260 = vst [vmem:[%s402_s25 + $0x70] sm:$0xff] %v244_v0 }
  0x24   : > { %261 = vst [vmem:[%s402_s25 + $0x78] sm:$0xff] %v245_v2 }
  0x25 PF: > { %s13_s12 = sadd.s32 1, %s345_s12  }
  0x26   : > { %p10_p4 = scmp.ge.s32.totalorder %s13_s12, 6  }
  0x28   :  { %12 = sbr.rel (!%p10_p4) target bundleno = 1 (0x1), region = 62 }

// kernel: double_conv.4
= control target key start
LH: loop header
LB: loop body
LE: loop exit
PB: predicated region body
PF: predicated region fallthrough
CT: control target
= control target key end

     0   :  { %s686_s15 = smov 0   ;;  %s777_s0 = inlined_call_operand.vmem [shape: bf16[512,128], index: 0, kind: input, shape index: {}]   ;;  %s778_s1 = inlined_call_operand.vmem [shape: bf16[128,128], index: 1, kind: input, shape index: {}]   ;;  %s779_s2 = inlined_call_operand.vmem [shape: f32[512,128], index: 2, kind: output, shape index: {0}]   ;;  %s780_s3 = inlined_call_operand.vmem [shape: f32[1,128], index: 3, kind: output, shape index: {1}]   ;;  %s781_s4 = inlined_call_operand.vmem [shape: f32[1,128], index: 4, kind: output, shape index: {2}]  }
   0x1 LB: > { %s527_s16 = sadd.s32 4294967295, %s658_s15   ;;  %p531_p0 = scmp.ge.s32.totalorder %s658_s15, 1  ;;  %s658_s15 = sphi %s686_s15, %s15_s15  }
   0x2   : > { %p158_p1 = scmp.lt.s32.totalorder %s658_s15, 5 }
   0x4   : > { %p159_p2 = pnand %p531_p0, %p158_p1 }
   0x5   : > { %s532_s25 = sshll.u32 (!%p159_p2), %s527_s16, 4  ;;  %p600_p4 = scmp.ne.s32.totalorder (!%p159_p2), %s527_s16, 0 }
   0x6   : > { %162 = sbr.rel (%p159_p2) target bundleno = 252 (0xfc), region = 28  ;;  %p185_p3 = scmp.lt.s32.totalorder (!%p159_p2), %s532_s25, 63 }
   0xb   : > { %v618_v0 = vld [vmem:[%s778_s1 + $0x38] sm:$0xff]  ;;  %v617_v1 = vld [vmem:[%s778_s1 + $0x30] sm:$0xff]  ;;  %v616_v2 = vld [vmem:[%s778_s1 + $0x28] sm:$0xff]  ;;  %s783_s25 = smov (!%p185_p3, %s532_s25), 63 }
   0xc   : > { %324 = vmatpush.bf16.msra.mxu0 %v618_v0  ;;  %619 = vmatpush.bf16.msra.mxu1 %v618_v0  ;;  %v615_v3 = vld [vmem:[%s778_s1 + $0x20] sm:$0xff]  ;;  %v614_v4 = vld [vmem:[%s778_s1 + $0x18] sm:$0xff]  ;;  %v613_v5 = vld [vmem:[%s778_s1 + $0x10] sm:$0xff]  ;;  %s533_s6 = sshll.u32 %s783_s25, 2  ;;  %s535_s12 = sshll.u32 %s783_s25, 3 }
   0xd   : > { %620 = vmatpush.bf16.msra.mxu2 %v618_v0  ;;  %621 = vmatpush.bf16.msra.mxu3 %v618_v0  ;;  %v612_v6 = vld [vmem:[%s778_s1 + $0x8] sm:$0xff]  ;;  %v611_v7 = vld [vmem:[%s778_s1] sm:$0xff]  ;;  %s188_s11 = scalar_lea.vmem %s777_s0, %s533_s6  ;;  %s730_s17 = scalar_lea.vmem %s779_s2, %s535_s12 }
   0xe   : > { %v603_v8 = vld [vmem:[%s188_s11] sm:$0xff]  ;;  %v605_v9 = vld [vmem:[%s188_s11 + $0x10] sm:$0xff]  ;;  %v604_v12 = vld [vmem:[%s188_s11 + $0x8] sm:$0xff] }
   0xf   : > { %v607_v10 = vld [vmem:[%s188_s11 + $0x20] sm:$0xff]  ;;  %v609_v11 = vld [vmem:[%s188_s11 + $0x30] sm:$0xff]  ;;  %v606_v13 = vld [vmem:[%s188_s11 + $0x18] sm:$0xff] }
  0x10   : > { %325 = vmatpush.bf16.msra.mxu0 %v617_v1  ;;  %622 = vmatpush.bf16.msra.mxu1 %v617_v1  ;;  %v608_v14 = vld [vmem:[%s188_s11 + $0x28] sm:$0xff]  ;;  %v610_v15 = vld [vmem:[%s188_s11 + $0x38] sm:$0xff] }
  0x11   : > { %623 = vmatpush.bf16.msra.mxu2 %v617_v1  ;;  %624 = vmatpush.bf16.msra.mxu3 %v617_v1 }
  0x14   : > { %326 = vmatpush.bf16.msra.mxu0 %v616_v2  ;;  %625 = vmatpush.bf16.msra.mxu1 %v616_v2 }
  0x15   : > { %626 = vmatpush.bf16.msra.mxu2 %v616_v2  ;;  %627 = vmatpush.bf16.msra.mxu3 %v616_v2 }
  0x18   : > { %327 = vmatpush.bf16.msra.mxu0 %v615_v3  ;;  %628 = vmatpush.bf16.msra.mxu1 %v615_v3 }
  0x19   : > { %629 = vmatpush.bf16.msra.mxu2 %v615_v3  ;;  %630 = vmatpush.bf16.msra.mxu3 %v615_v3 }
  0x1c   : > { %328 = vmatpush.bf16.msra.mxu0 %v614_v4  ;;  %631 = vmatpush.bf16.msra.mxu1 %v614_v4 }
  0x1d   : > { %632 = vmatpush.bf16.msra.mxu2 %v614_v4  ;;  %633 = vmatpush.bf16.msra.mxu3 %v614_v4 }
  0x20   : > { %329 = vmatpush.bf16.msra.mxu0 %v613_v5  ;;  %634 = vmatpush.bf16.msra.mxu1 %v613_v5 }
  0x21   : > { %635 = vmatpush.bf16.msra.mxu2 %v613_v5  ;;  %636 = vmatpush.bf16.msra.mxu3 %v613_v5 }
  0x24   : > { %330 = vmatpush.bf16.msra.mxu0 %v612_v6  ;;  %637 = vmatpush.bf16.msra.mxu1 %v612_v6 }
  0x25   : > { %638 = vmatpush.bf16.msra.mxu2 %v612_v6  ;;  %639 = vmatpush.bf16.msra.mxu3 %v612_v6 }
  0x28   : > { %331 = vmatpush.bf16.msra.mxu0 %v611_v7  ;;  %640 = vmatpush.bf16.msra.mxu1 %v611_v7 }
  0x29   : > { %641 = vmatpush.bf16.msra.mxu2 %v611_v7  ;;  %642 = vmatpush.bf16.msra.mxu3 %v611_v7 }
  0x2b   : > { %332 = vmatmul.bf16.vlgmr.msra.gmra.mxu0 %v603_v8  ;;  %342 = vmatmul.bf16.vlgmr.msra.gmra.mxu1 %v605_v9 }
  0x2c   : > { %352 = vmatmul.bf16.vlgmr.msra.gmra.mxu2 %v607_v10  ;;  %362 = vmatmul.bf16.vlgmr.msra.gmra.mxu3 %v609_v11 }
  0x3b   : > { %337 = vmatmul.bf16.gmra.mxu0 %v604_v12  ;;  %347 = vmatmul.bf16.gmra.mxu1 %v606_v13 }
  0x3c   : > { %357 = vmatmul.bf16.gmra.mxu2 %v608_v14  ;;  %367 = vmatmul.bf16.gmra.mxu3 %v610_v15 }
  0xa8   : > { %v333_v16 = vpop.f32.mrf.mxu0  ;;  %v343_v17 = vpop.f32.mrf.mxu1 }
  0xa9   : > { %373 = vst [vmem:[%s730_s17] sm:$0xff] %v333_v16 }
  0xaa   : > { %377 = vst [vmem:[%s730_s17 + $0x20] sm:$0xff] %v343_v17 }
  0xaf   : > { %v353_v18 = vpop.f32.mrf.mxu2  ;;  %v734_v19 = vpop.f32.mrf.mxu3 }
  0xb0   : > { %381 = vst [vmem:[%s730_s17 + $0x40] sm:$0xff] %v353_v18  ;;  %v335_v20 = vpop.f32.mrf.mxu0  ;;  %v345_v21 = vpop.f32.mrf.mxu1 }
  0xb1   : > { %385 = vst [vmem:[%s730_s17 + $0x60] sm:$0xff] %v734_v19 }
  0xb2   : > { %374 = vst [vmem:[%s730_s17 + $0x8] sm:$0xff] %v335_v20 }
  0xb3   : > { %378 = vst [vmem:[%s730_s17 + $0x28] sm:$0xff] %v345_v21 }
  0xb7   : > { %v355_v22 = vpop.f32.mrf.mxu2  ;;  %v365_v23 = vpop.f32.mrf.mxu3 }
  0xb8   : > { %382 = vst [vmem:[%s730_s17 + $0x48] sm:$0xff] %v355_v22  ;;  %v338_v24 = vpop.f32.mrf.mxu0  ;;  %v348_v25 = vpop.f32.mrf.mxu1 }
  0xb9   : > { %386 = vst [vmem:[%s730_s17 + $0x68] sm:$0xff] %v365_v23 }
  0xba   : > { %375 = vst [vmem:[%s730_s17 + $0x10] sm:$0xff] %v338_v24 }
  0xbb   : > { %379 = vst [vmem:[%s730_s17 + $0x30] sm:$0xff] %v348_v25 }
  0xbf   : > { %v358_v26 = vpop.f32.mrf.mxu2  ;;  %v368_v27 = vpop.f32.mrf.mxu3 }
  0xc0   : > { %383 = vst [vmem:[%s730_s17 + $0x50] sm:$0xff] %v358_v26  ;;  %v340_v28 = vpop.f32.mrf.mxu0  ;;  %v350_v29 = vpop.f32.mrf.mxu1 }
  0xc1   : > { %387 = vst [vmem:[%s730_s17 + $0x70] sm:$0xff] %v368_v27 }
  0xc2   : > { %376 = vst [vmem:[%s730_s17 + $0x18] sm:$0xff] %v340_v28 }
  0xc3   : > { %380 = vst [vmem:[%s730_s17 + $0x38] sm:$0xff] %v350_v29 }
  0xc5   : > { %392 = sbr.rel (%p600_p4) target bundleno = 205 (0xcd), region = 32 }
  0xc7   : > { %v360_v30 = vpop.f32.mrf.mxu2  ;;  %v370_v31 = vpop.f32.mrf.mxu3 }
  0xc8   : > { %384 = vst [vmem:[%s730_s17 + $0x58] sm:$0xff] %v360_v30 }
  0xc9   : > { %388 = vst [vmem:[%s730_s17 + $0x78] sm:$0xff] %v370_v31 }
  0xca   : > { %v660_v32 = vmov 0.0  }
  0xcb   : > { %393 = vst [vmem:[%s780_s3] sm:$0x1] %v660_v32 }
  0xcc   : > { %394 = vst [vmem:[%s781_s4] sm:$0x1] %v660_v32 }
  0xcd PF: > { %v396_v33 = vadd.f32 %v335_v20, %v333_v16  ;;  %v420_v34 = vmul.f32 %v333_v16, %v333_v16  ;;  %v421_v35 = vmul.f32 %v335_v20, %v335_v20  ;;  %v422_v37 = vmul.f32 %v338_v24, %v338_v24 }
  0xce   : > { %v423_v39 = vmul.f32 %v340_v28, %v340_v28  ;;  %v424_v42 = vmul.f32 %v343_v17, %v343_v17  ;;  %v425_v45 = vmul.f32 %v345_v21, %v345_v21  ;;  %v426_v48 = vmul.f32 %v348_v25, %v348_v25 }
  0xcf   : > { %v397_v36 = vadd.f32 %v396_v33, %v338_v24  ;;  %v436_v40 = vadd.f32 %v421_v35, %v420_v34  ;;  %v427_v51 = vmul.f32 %v350_v29, %v350_v29  ;;  %v428_v54 = vmul.f32 %v353_v18, %v353_v18 }
  0xd0   : > { %v429_v57 = vmul.f32 %v355_v22, %v355_v22  ;;  %v430_v60 = vmul.f32 %v358_v26, %v358_v26  ;;  %v431_v63 = vmul.f32 %v360_v30, %v360_v30  ;;  %v432_v2 = vmul.f32 %v734_v19, %v734_v19 }
  0xd1   : > { %v398_v38 = vadd.f32 %v397_v36, %v340_v28  ;;  %v437_v43 = vadd.f32 %v436_v40, %v422_v37  ;;  %v433_v5 = vmul.f32 %v365_v23, %v365_v23  ;;  %v434_v8 = vmul.f32 %v368_v27, %v368_v27 }
  0xd2   : > { %v435_v11 = vmul.f32 %v370_v31, %v370_v31 }
  0xd3   : > { %v399_v41 = vadd.f32 %v398_v38, %v343_v17  ;;  %v438_v46 = vadd.f32 %v437_v43, %v423_v39  ;;  %v419_v28 = vld [vmem:[%s781_s4] sm:$0x1] }
  0xd5   : > { %v400_v44 = vadd.f32 %v399_v41, %v345_v21  ;;  %v439_v49 = vadd.f32 %v438_v46, %v424_v42 }
  0xd7   : > { %v401_v47 = vadd.f32 %v400_v44, %v348_v25  ;;  %v440_v52 = vadd.f32 %v439_v49, %v425_v45 }
  0xd9   : > { %v402_v50 = vadd.f32 %v401_v47, %v350_v29  ;;  %v441_v55 = vadd.f32 %v440_v52, %v426_v48 }
  0xdb   : > { %v403_v53 = vadd.f32 %v402_v50, %v353_v18  ;;  %v442_v58 = vadd.f32 %v441_v55, %v427_v51 }
  0xdd   : > { %v404_v56 = vadd.f32 %v403_v53, %v355_v22  ;;  %v443_v61 = vadd.f32 %v442_v58, %v428_v54 }
  0xdf   : > { %v405_v59 = vadd.f32 %v404_v56, %v358_v26  ;;  %v444_v0 = vadd.f32 %v443_v61, %v429_v57 }
  0xe1   : > { %v406_v62 = vadd.f32 %v405_v59, %v360_v30  ;;  %v445_v3 = vadd.f32 %v444_v0, %v430_v60 }
  0xe3   : > { %v407_v1 = vadd.f32 %v406_v62, %v734_v19  ;;  %v446_v6 = vadd.f32 %v445_v3, %v431_v63 }
  0xe5   : > { %v408_v4 = vadd.f32 %v407_v1, %v365_v23  ;;  %v447_v9 = vadd.f32 %v446_v6, %v432_v2  ;;  %v395_v23 = vld [vmem:[%s780_s3] sm:$0x1] }
  0xe7   : > { %v409_v7 = vadd.f32 %v408_v4, %v368_v27  ;;  %v448_v12 = vadd.f32 %v447_v9, %v433_v5 }
  0xe9   : > { %v410_v10 = vadd.f32 %v409_v7, %v370_v31  ;;  %v449_v14 = vadd.f32 %v448_v12, %v434_v8 }
  0xeb   : > { %v411_v13 = vrot.slane %v410_v10, 4  ;;  %v450_v16 = vadd.f32 %v449_v14, %v435_v11 }
  0xed   : > { %v412_v15 = vadd.f32 %v411_v13, %v410_v10  ;;  %v451_v18 = vrot.slane %v450_v16, 4 }
  0xef   : > { %v413_v17 = vrot.slane %v412_v15, 2  ;;  %v452_v21 = vadd.f32 %v451_v18, %v450_v16 }
  0xf1   : > { %v414_v20 = vadd.f32 %v413_v17, %v412_v15  ;;  %v453_v19 = vrot.slane %v452_v21, 2 }
  0xf3   : > { %v415_v22 = vrot.slane %v414_v20, 1  ;;  %v454_v25 = vadd.f32 %v453_v19, %v452_v21 }
  0xf5   : > { %v416_v24 = vadd.f32 %v415_v22, %v414_v20  ;;  %v455_v27 = vrot.slane %v454_v25, 1 }
  0xf7   : > { %v417_v26 = vadd.f32 %v416_v24, %v395_v23  ;;  %v456_v29 = vadd.f32 %v455_v27, %v454_v25 }
  0xf9   : > { %418 = vst [vmem:[%s780_s3] sm:$0x1] %v417_v26  ;;  %v457_v30 = vadd.f32 %v456_v29, %v419_v28 }
  0xfb   : > { %458 = vst [vmem:[%s781_s4] sm:$0x1] %v457_v30 }
  0xfc PF: > { %s15_s15 = sadd.s32 1, %s658_s15  }
  0xfd   : > { %p12_p5 = scmp.ge.s32.totalorder %s15_s15, 6  }
  0xff   :  { %14 = sbr.rel (!%p12_p5) target bundleno = 1 (0x1), region = 78 }

</bundles_post_ra>
